<compile_context>
chip_gen: v7x
topology: tpu7x:2x2x1
jax: 0.10.0
libtpu: 0.0.40
codegen_flags: <defaults>
</compile_context>

<pallas_src>
import functools

import jax
import jax.numpy as jnp
from jax.experimental import pallas as pl
from jax.experimental.pallas import tpu as pltpu

D_IN, D_H1, D_H2, D_OUT = 320, 128, 64, 2


def mlp_kernel(x_ref, w1_ref, b1_ref, w2_ref, b2_ref, w3_ref, b3_ref, o_ref):
    # x arrives f32 straight from HBM (no wrapper copy); cast to bf16 in VMEM.
    x = x_ref[...].astype(jnp.bfloat16)
    # Layer 1: (TB, 320)bf16 @ (320, 128)bf16 -> f32 acc, +bias, ReLU
    h1 = jnp.dot(x, w1_ref[...], preferred_element_type=jnp.float32)
    h1 = jnp.maximum(h1 + b1_ref[...], 0.0).astype(jnp.bfloat16)
    # Layer 2: (TB, 128)bf16 @ (128, 64)bf16 -> f32 acc, +bias, ReLU
    h2 = jnp.dot(h1, w2_ref[...], preferred_element_type=jnp.float32)
    h2 = jnp.maximum(h2 + b2_ref[...], 0.0).astype(jnp.bfloat16)
    # Layer 3: (TB, 64)bf16 @ (64, 2)bf16 -> f32 acc, +bias
    out = jnp.dot(h2, w3_ref[...], preferred_element_type=jnp.float32)
    o_ref[...] = (out + b3_ref[...]).astype(o_ref.dtype)


def _round_up(n, m):
    return ((n + m - 1) // m) * m


@functools.partial(jax.jit, static_argnames=("block_b",))
def combined_mlp(x, w1, b1, w2, b2, w3, b3, *, block_b=2048):
    """x: (B, 320) f32.  Weights (in, out) f32, biases (1, out) f32."""
    batch = x.shape[0]

    # Clamp the requested tile to a multiple of 8 (sublane rule).
    block_b = max(8, 8 * (block_b // 8))
    b8 = _round_up(batch, 8)
    if b8 >= 16:
        # Cap the tile so the grid has >=2 "parallel" steps whenever possible
        # (both v7x TensorCores pull the x stream); large batches use block_b.
        tb = min(block_b, _round_up(pl.cdiv(b8, 2), 8))
    else:
        tb = 8

    grid = (pl.cdiv(batch, tb),)  # final block may be partial -> masked by Pallas

    # bf16 weights for the MXU (tiny arrays, negligible HBM traffic);
    # biases stay f32 (added to the f32 accumulator). x stays f32.
    w1_bf = w1.astype(jnp.bfloat16)
    w2_bf = w2.astype(jnp.bfloat16)
    w3_bf = w3.astype(jnp.bfloat16)

    weight_bytes = 2 * (D_IN * D_H1 + D_H1 * D_H2 + D_H2 * D_OUT) + 4 * (
        D_H1 + D_H2 + D_OUT
    )
    cost = pl.CostEstimate(
        flops=2 * batch * (D_IN * D_H1 + D_H1 * D_H2 + D_H2 * D_OUT),
        transcendentals=0,
        # x read in f32 (4 B/elem), f32 output, resident weights once.
        bytes_accessed=batch * D_IN * 4 + batch * D_OUT * 4 + weight_bytes,
    )

    out = pl.pallas_call(
        mlp_kernel,
        out_shape=jax.ShapeDtypeStruct((batch, D_OUT), jnp.float32),
        grid=grid,
        in_specs=[
            # x: tiled along batch, streamed + double-buffered (default depth).
            pl.BlockSpec((tb, D_IN), lambda i: (i, 0)),
            # Weights / biases: full blocks, constant index_map -> resident
            # in VMEM across all grid steps (no re-DMA per step).
            pl.BlockSpec((D_IN, D_H1), lambda i: (0, 0)),
            pl.BlockSpec((1, D_H1), lambda i: (0, 0)),
            pl.BlockSpec((D_H1, D_H2), lambda i: (0, 0)),
            pl.BlockSpec((1, D_H2), lambda i: (0, 0)),
            pl.BlockSpec((D_H2, D_OUT), lambda i: (0, 0)),
            pl.BlockSpec((1, D_OUT), lambda i: (0, 0)),
        ],
        out_specs=pl.BlockSpec((tb, D_OUT), lambda i: (i, 0)),
        compiler_params=pltpu.CompilerParams(
            dimension_semantics=("parallel",),  # megacore sharding on v7x
            vmem_limit_bytes=32 * 1024 * 1024,  # safe on v5e/v6e/v7x
        ),
        cost_estimate=cost,
    )(x, w1_bf, b1, w2_bf, b2, w3_bf, b3)

    return out


def init_params(key):
    """Deterministic parameter init mimicking nn.Linear default (uniform)."""
    dims = [(D_IN, D_H1), (D_H1, D_H2), (D_H2, D_OUT)]
    params = []
    for i, (fan_in, fan_out) in enumerate(dims):
        kw, kb, key = jax.random.split(jax.random.fold_in(key, i), 3)
        bound = 1.0 / jnp.sqrt(float(fan_in))
        # stored as (in, out): equivalent to PyTorch W.T
        w = jax.random.uniform(kw, (fan_in, fan_out), jnp.float32, -bound, bound)
        b = jax.random.uniform(kb, (1, fan_out), jnp.float32, -bound, bound)
        params += [w, b]
    return params


def reference_bf16(x, w1, b1, w2, b2, w3, b3):
    """Pure-JAX reference with the same bf16-operand / f32-accumulate math."""
    xb = x.astype(jnp.bfloat16)
    h1 = jnp.dot(xb, w1.astype(jnp.bfloat16), preferred_element_type=jnp.float32)
    h1 = jnp.maximum(h1 + b1, 0.0).astype(jnp.bfloat16)
    h2 = jnp.dot(h1, w2.astype(jnp.bfloat16), preferred_element_type=jnp.float32)
    h2 = jnp.maximum(h2 + b2, 0.0).astype(jnp.bfloat16)
    out = jnp.dot(h2, w3.astype(jnp.bfloat16), preferred_element_type=jnp.float32)
    return out + b3


def reference_f32(x, w1, b1, w2, b2, w3, b3):
    h1 = jnp.maximum(x @ w1 + b1, 0.0)
    h2 = jnp.maximum(h1 @ w2 + b2, 0.0)
    return h2 @ w3 + b3


if __name__ == "__main__":
    key = jax.random.PRNGKey(0)
    kx, kp = jax.random.split(key)
    params = init_params(kp)

    # Case 1: batch divides the tile exactly.
    batch = 8
    x = jax.random.normal(kx, (batch, D_IN), dtype=jnp.float32)
    out = jax.block_until_ready(combined_mlp(x, *params))
    assert out.shape == (batch, D_OUT)
    assert jnp.allclose(out, reference_bf16(x, *params), atol=1e-2, rtol=1e-2)
    assert jnp.allclose(out, reference_f32(x, *params), atol=5e-2, rtol=5e-2)

    # Case 2: ragged batch (not a multiple of the tile) — exercises the
    # masked final-block path that replaces the old jnp.pad copy.
    batch2 = 13
    x2 = jax.random.normal(jax.random.fold_in(kx, 1), (batch2, D_IN),
                           dtype=jnp.float32)
    out2 = jax.block_until_ready(combined_mlp(x2, *params, block_b=8))
    assert out2.shape == (batch2, D_OUT)
    assert jnp.allclose(out2, reference_f32(x2, *params), atol=5e-2, rtol=5e-2)

    print("KERNEL_OK")
</pallas_src>

<mosaic_0001>
module attributes {stable_mosaic.version = 11 : i64} {
  func.func @mlp_kernel(%arg0: i32, %arg1: memref<8x320xf32, #tpu.memory_space<vmem>>, %arg2: memref<320x128xbf16, #tpu.memory_space<vmem>>, %arg3: memref<1x128xf32, #tpu.memory_space<vmem>>, %arg4: memref<128x64xbf16, #tpu.memory_space<vmem>>, %arg5: memref<1x64xf32, #tpu.memory_space<vmem>>, %arg6: memref<64x2xbf16, #tpu.memory_space<vmem>>, %arg7: memref<1x2xf32, #tpu.memory_space<vmem>>, %arg8: memref<8x2xf32, #tpu.memory_space<vmem>>) attributes {dimension_semantics = [#tpu.dimension_semantics<parallel>], iteration_bounds = array<i64: 1>, scalar_prefetch = 0 : i64, scratch_operands = 0 : i64, tpu.core_type = #tpu.core_type<tc>, window_params = [{transform_indices = @transform_0, window_bounds = array<i64: 8, 320>}, {pipeline_mode = #tpu.pipeline_mode<synchronous>, transform_indices = @transform_1, window_bounds = array<i64: 320, 128>}, {pipeline_mode = #tpu.pipeline_mode<synchronous>, transform_indices = @transform_2, window_bounds = array<i64: 1, 128>}, {pipeline_mode = #tpu.pipeline_mode<synchronous>, transform_indices = @transform_3, window_bounds = array<i64: 128, 64>}, {pipeline_mode = #tpu.pipeline_mode<synchronous>, transform_indices = @transform_4, window_bounds = array<i64: 1, 64>}, {pipeline_mode = #tpu.pipeline_mode<synchronous>, transform_indices = @transform_5, window_bounds = array<i64: 64, 2>}, {pipeline_mode = #tpu.pipeline_mode<synchronous>, transform_indices = @transform_6, window_bounds = array<i64: 1, 2>}, {transform_indices = @transform_7, window_bounds = array<i64: 8, 2>}]} {
    %c0 = arith.constant 0 : index
    %c0_0 = arith.constant 0 : index
    %0 = vector.load %arg1[%c0, %c0_0] : memref<8x320xf32, #tpu.memory_space<vmem>>, vector<8x320xf32>
    %1 = arith.truncf %0 : vector<8x320xf32> to vector<8x320xbf16>
    %c0_1 = arith.constant 0 : index
    %c0_2 = arith.constant 0 : index
    %2 = vector.load %arg2[%c0_1, %c0_2] : memref<320x128xbf16, #tpu.memory_space<vmem>>, vector<320x128xbf16>
    %cst = arith.constant dense<0.000000e+00> : vector<8x128xf32>
    %3 = tpu.matmul %1, %2, %cst {dimension_numbers = #tpu.dot_dimension_numbers<[1], [0], [0], [1], [0, 0, 1, 1], [], []>} : vector<8x320xbf16>, vector<320x128xbf16>, vector<8x128xf32> -> vector<8x128xf32>
    %c0_3 = arith.constant 0 : index
    %c0_4 = arith.constant 0 : index
    %4 = vector.load %arg3[%c0_3, %c0_4] : memref<1x128xf32, #tpu.memory_space<vmem>>, vector<1x128xf32>
    %5 = vector.broadcast %4 : vector<1x128xf32> to vector<8x128xf32>
    %6 = arith.addf %3, %5 : vector<8x128xf32>
    %cst_5 = arith.constant 0.000000e+00 : f32
    %7 = vector.broadcast %cst_5 : f32 to vector<8x128xf32>
    %8 = arith.maximumf %6, %7 : vector<8x128xf32>
    %9 = arith.truncf %8 : vector<8x128xf32> to vector<8x128xbf16>
    %c0_6 = arith.constant 0 : index
    %c0_7 = arith.constant 0 : index
    %10 = vector.load %arg4[%c0_6, %c0_7] : memref<128x64xbf16, #tpu.memory_space<vmem>>, vector<128x64xbf16>
    %cst_8 = arith.constant dense<0.000000e+00> : vector<8x64xf32>
    %11 = tpu.matmul %9, %10, %cst_8 {dimension_numbers = #tpu.dot_dimension_numbers<[1], [0], [0], [1], [0, 0, 1, 1], [], []>} : vector<8x128xbf16>, vector<128x64xbf16>, vector<8x64xf32> -> vector<8x64xf32>
    %c0_9 = arith.constant 0 : index
    %c0_10 = arith.constant 0 : index
    %12 = vector.load %arg5[%c0_9, %c0_10] : memref<1x64xf32, #tpu.memory_space<vmem>>, vector<1x64xf32>
    %13 = vector.broadcast %12 : vector<1x64xf32> to vector<8x64xf32>
    %14 = arith.addf %11, %13 : vector<8x64xf32>
    %cst_11 = arith.constant 0.000000e+00 : f32
    %15 = vector.broadcast %cst_11 : f32 to vector<8x64xf32>
    %16 = arith.maximumf %14, %15 : vector<8x64xf32>
    %17 = arith.truncf %16 : vector<8x64xf32> to vector<8x64xbf16>
    %c0_12 = arith.constant 0 : index
    %c0_13 = arith.constant 0 : index
    %18 = vector.load %arg6[%c0_12, %c0_13] : memref<64x2xbf16, #tpu.memory_space<vmem>>, vector<64x2xbf16>
    %cst_14 = arith.constant dense<0.000000e+00> : vector<8x2xf32>
    %19 = tpu.matmul %17, %18, %cst_14 {dimension_numbers = #tpu.dot_dimension_numbers<[1], [0], [0], [1], [0, 0, 1, 1], [], []>} : vector<8x64xbf16>, vector<64x2xbf16>, vector<8x2xf32> -> vector<8x2xf32>
    %c0_15 = arith.constant 0 : index
    %c0_16 = arith.constant 0 : index
    %20 = vector.load %arg7[%c0_15, %c0_16] : memref<1x2xf32, #tpu.memory_space<vmem>>, vector<1x2xf32>
    %21 = vector.broadcast %20 : vector<1x2xf32> to vector<8x2xf32>
    %22 = arith.addf %19, %21 : vector<8x2xf32>
    %c0_17 = arith.constant 0 : index
    %c0_18 = arith.constant 0 : index
    %23 = vector.load %arg8[%c0_17, %c0_18] : memref<8x2xf32, #tpu.memory_space<vmem>>, vector<8x2xf32>
    tpu.vector_store %arg8[%c0_17, %c0_18], %22 {strides = array<i32>} : memref<8x2xf32, #tpu.memory_space<vmem>>, vector<8x2xf32>,
    return
  }
  func.func @transform_0(%arg0: i32) -> (i32, i32) {
    %c0_i32 = arith.constant 0 : i32
    %c0_i32_0 = arith.constant 0 : i32
    return %arg0, %c0_i32 : i32, i32
  }
  func.func @transform_1(%arg0: i32) -> (i32, i32) {
    %c0_i32 = arith.constant 0 : i32
    %c0_i32_0 = arith.constant 0 : i32
    %c0_i32_1 = arith.constant 0 : i32
    return %c0_i32, %c0_i32_0 : i32, i32
  }
  func.func @transform_2(%arg0: i32) -> (i32, i32) {
    %c0_i32 = arith.constant 0 : i32
    %c0_i32_0 = arith.constant 0 : i32
    %c0_i32_1 = arith.constant 0 : i32
    return %c0_i32, %c0_i32_0 : i32, i32
  }
  func.func @transform_3(%arg0: i32) -> (i32, i32) {
    %c0_i32 = arith.constant 0 : i32
    %c0_i32_0 = arith.constant 0 : i32
    %c0_i32_1 = arith.constant 0 : i32
    return %c0_i32, %c0_i32_0 : i32, i32
  }
  func.func @transform_4(%arg0: i32) -> (i32, i32) {
    %c0_i32 = arith.constant 0 : i32
    %c0_i32_0 = arith.constant 0 : i32
    %c0_i32_1 = arith.constant 0 : i32
    return %c0_i32, %c0_i32_0 : i32, i32
  }
  func.func @transform_5(%arg0: i32) -> (i32, i32) {
    %c0_i32 = arith.constant 0 : i32
    %c0_i32_0 = arith.constant 0 : i32
    %c0_i32_1 = arith.constant 0 : i32
    return %c0_i32, %c0_i32_0 : i32, i32
  }
  func.func @transform_6(%arg0: i32) -> (i32, i32) {
    %c0_i32 = arith.constant 0 : i32
    %c0_i32_0 = arith.constant 0 : i32
    %c0_i32_1 = arith.constant 0 : i32
    return %c0_i32, %c0_i32_0 : i32, i32
  }
  func.func @transform_7(%arg0: i32) -> (i32, i32) {
    %c0_i32 = arith.constant 0 : i32
    %c0_i32_0 = arith.constant 0 : i32
    return %arg0, %c0_i32 : i32, i32
  }
}

</mosaic_0001>

<bundles_post_ra>
// kernel: combined_mlp.1
= control target key start
LH: loop header
LB: loop body
LE: loop exit
PB: predicated region body
PF: predicated region fallthrough
CT: control target
= control target key end

     0   :  { %v643_v1 = vmov 0.0   ;;  %vm644_vm0 = vmmov 0   ;;  %vm200_vm1 = vcmask 523264   ;;  %vm481_vm2 = vcmask 15360   ;;  %s826_s1 = inlined_call_operand.vmem [shape: bf16[320,128], index: 1, kind: input, shape index: {}]   ;;  %s827_s0 = inlined_call_operand.vmem [shape: f32[8,320], index: 0, kind: input, shape index: {}]   ;;  %s828_s3 = inlined_call_operand.vmem [shape: bf16[128,64], index: 3, kind: input, shape index: {}]   ;;  %s829_s5 = inlined_call_operand.vmem [shape: bf16[64,2], index: 5, kind: input, shape index: {}]   ;;  %s830_s2 = inlined_call_operand.vmem [shape: f32[1,128], index: 2, kind: input, shape index: {}]   ;;  %s831_s4 = inlined_call_operand.vmem [shape: f32[1,64], index: 4, kind: input, shape index: {}]   ;;  %s832_s6 = inlined_call_operand.vmem [shape: f32[1,2], index: 6, kind: input, shape index: {}]   ;;  %s833_s7 = inlined_call_operand.vmem [shape: f32[8,2], index: 7, kind: output, shape index: {}]  }
   0x1   :  { %v611_v0 = vld [vmem:[%s826_s1 + $0x40] sm:$0xff]   ;;  %565 = vmatprep.subr.bf16.mxu1 %v643_v1  ;;  %573 = vmatprep.mubr.msk.bf16.mxu1 %vm644_vm0, %v643_v1  ;;  %v613_v3 = vld [vmem:[%s826_s1 + $0x48] sm:$0xff]   ;;  %v615_v5 = vld [vmem:[%s826_s1 + $0x50] sm:$0xff]  }
   0x2   :  { %v612_v2 = vld [vmem:[%s826_s1] sm:$0xff]   ;;  %524 = vmatprep.subr.bf16.mxu0 %v611_v0  ;;  %v614_v4 = vld [vmem:[%s826_s1 + $0x8] sm:$0xff]   ;;  %v616_v6 = vld [vmem:[%s826_s1 + $0x10] sm:$0xff]  }
   0x3   :  { %525 = vmatpush3.bf16.msra.mxu0 %v612_v2  ;;  %v617_v7 = vld [vmem:[%s826_s1 + $0x58] sm:$0xff]   ;;  %v621_v8 = vld [vmem:[%s826_s1 + $0x80] sm:$0xff]   ;;  %v624_v11 = vld [vmem:[%s826_s1 + $0x88] sm:$0xff]  }
   0x4   :  { %526 = vmatprep.subr.bf16.mxu0 %v613_v3  ;;  %v618_v9 = vld [vmem:[%s826_s1 + $0x18] sm:$0xff]   ;;  %v619_v10 = vld [vmem:[%s826_s1 + $0x60] sm:$0xff]   ;;  %566 = vmatpush3.bf16.msra.mxu1 %v621_v8  ;;  %v622_v13 = vld [vmem:[%s826_s1 + $0x68] sm:$0xff]  }
   0x5   :  { %567 = vmatprep.subr.bf16.mxu1 %v643_v1  ;;  %v620_v12 = vld [vmem:[%s826_s1 + $0x20] sm:$0xff]   ;;  %v627_v14 = vld [vmem:[%s826_s1 + $0x90] sm:$0xff]   ;;  %v623_v15 = vld [vmem:[%s826_s1 + $0x28] sm:$0xff]  }
   0x6   :  { %v625_v16 = vld [vmem:[%s826_s1 + $0x70] sm:$0xff]   ;;  %v28_v17 = vld [vmem:[%s827_s0 + $0x8] sm:$0xff]  ;;  %v630_v20 = vld [vmem:[%s826_s1 + $0x98] sm:$0xff]  }
   0x7   :  { %527 = vmatpush3.bf16.msra.mxu0 %v614_v4  ;;  %v29_v18 = vld [vmem:[%s827_s0 + $0x10] sm:$0xff]  ;;  %v31_v19 = vpack.c.bf16 %v28_v17, %v28_v17  ;;  %v628_v22 = vld [vmem:[%s826_s1 + $0x78] sm:$0xff]   ;;  %v631_v24 = vld [vmem:[%s828_s3] sm:$0xff]  }
   0x8   :  { %528 = vmatprep.subr.bf16.mxu0 %v615_v5  ;;  %568 = vmatpush3.bf16.msra.mxu1 %v624_v11  ;;  %v626_v21 = vld [vmem:[%s826_s1 + $0x30] sm:$0xff]   ;;  %v32_v23 = vpack.c.bf16 %v29_v18, %v29_v18  ;;  %v629_v25 = vld [vmem:[%s826_s1 + $0x38] sm:$0xff]   ;;  %v27_v26 = vld [vmem:[%s827_s0] sm:$0xff] }
   0x9   :  { %569 = vmatprep.subr.bf16.mxu1 %v643_v1  ;;  %236 = vmatprep.mubr.bf16.mxu0 %v31_v19  ;;  %v632_v27 = vld [vmem:[%s828_s3 + $0x8] sm:$0xff]   ;;  %v30_v28 = vpack.c.bf16 %v27_v26, %v27_v26  ;;  %v633_v29 = vld [vmem:[%s828_s3 + $0x10] sm:$0xff]   ;;  %v634_v30 = vld [vmem:[%s828_s3 + $0x18] sm:$0xff]  }
   0xa   :  { %v635_v31 = vld [vmem:[%s828_s3 + $0x20] sm:$0xff]   ;;  %v636_v32 = vld [vmem:[%s828_s3 + $0x28] sm:$0xff]   ;;  %v637_v33 = vld [vmem:[%s828_s3 + $0x30] sm:$0xff]  }
   0xb   :  { %529 = vmatpush3.bf16.msra.mxu0 %v616_v6  ;;  %v638_v34 = vld [vmem:[%s828_s3 + $0x38] sm:$0xff]   ;;  %v639_v35 = vld [vmem:[%s829_s5] sm:$0xff]   ;;  %v640_v36 = vld [vmem:[%s829_s5 + $0x8] sm:$0xff]  }
   0xc   :  { %530 = vmatprep.subr.bf16.mxu0 %v617_v7  ;;  %570 = vmatpush3.bf16.msra.mxu1 %v627_v14  ;;  %v487_v43 = vld [vmem:[%s830_s2] ss:$0 sm:$0xff]  ;;  %v641_v51 = vld [vmem:[%s829_s5 + $0x10] sm:$0xff]   ;;  %v642_v52 = vld [vmem:[%s829_s5 + $0x18] sm:$0xff]  }
   0xd   :  { %571 = vmatprep.subr.bf16.mxu1 %v643_v1  ;;  %v509_v53 = vld [vmem:[%s831_s4] ss:$0 sm:$0xff] }
   0xe   :  { %v518_v61 = vld [vmem:[%s832_s6] ss:$0 sm:$0xff] }
   0xf   :  { %531 = vmatpush3.bf16.msra.mxu0 %v618_v9 }
  0x10   :  { %532 = vmatprep.subr.bf16.mxu0 %v619_v10  ;;  %572 = vmatpush3.bf16.msra.mxu1 %v630_v20 }
  0x11   :  { %577 = vmatprep.subr.bf16.mxu1 %v643_v1 }
  0x13   :  { %533 = vmatpush3.bf16.msra.mxu0 %v620_v12  ;;  %574 = vmatmul.mubr.msk.bf16.vlgmr.msra.gmra.mrb[0].mxu1 %vm200_vm1, %v32_v23 }
  0x14   :  { %534 = vmatprep.subr.bf16.mxu0 %v622_v13  ;;  %578 = vmatpush3.bf16.msra.mxu1 %v631_v24 }
  0x15   :  { %579 = vmatprep.subr.bf16.mxu1 %v643_v1  ;;  %593 = vmatprep.mubr.msk.bf16.mxu1 %vm644_vm0, %v643_v1 }
  0x17   :  { %535 = vmatpush3.bf16.msra.mxu0 %v623_v15 }
  0x18   :  { %536 = vmatprep.subr.bf16.mxu0 %v625_v16  ;;  %580 = vmatpush3.bf16.msra.mxu1 %v632_v27 }
  0x19   :  { %581 = vmatprep.subr.bf16.mxu1 %v643_v1 }
  0x1b   :  { %537 = vmatpush3.bf16.msra.mxu0 %v626_v21 }
  0x1c   :  { %538 = vmatprep.subr.bf16.mxu0 %v628_v22  ;;  %582 = vmatpush3.bf16.msra.mxu1 %v633_v29 }
  0x1d   :  { %583 = vmatprep.subr.bf16.mxu1 %v643_v1 }
  0x1f   :  { %539 = vmatpush3.bf16.msra.mxu0 %v629_v25 }
  0x20   :  { %597 = vmatprep.subr.bf16.mxu0 %v643_v1  ;;  %584 = vmatpush3.bf16.msra.mxu1 %v634_v30 }
  0x21   :  { %585 = vmatprep.subr.bf16.mxu1 %v643_v1 }
  0x22   :  { %237 = vmatmul.mubr.bf16.vlgmr.msra.gmra.mrb[0].mxu0 %v30_v28 }
  0x23   :  { %605 = vmatprep.mubr.msk.bf16.mxu0 %vm644_vm0, %v643_v1  ;;  %598 = vmatpush3.bf16.msra.mxu0 %v639_v35 }
  0x24   :  { %586 = vmatpush3.bf16.msra.mxu1 %v635_v31  ;;  %599 = vmatprep.subr.bf16.mxu0 %v643_v1 }
  0x25   :  { %587 = vmatprep.subr.bf16.mxu1 %v643_v1 }
  0x27   :  { %600 = vmatpush3.bf16.msra.mxu0 %v640_v36 }
  0x28   :  { %588 = vmatpush3.bf16.msra.mxu1 %v636_v32  ;;  %601 = vmatprep.subr.bf16.mxu0 %v643_v1 }
  0x29   :  { %589 = vmatprep.subr.bf16.mxu1 %v643_v1 }
  0x2b   :  { %602 = vmatpush3.bf16.msra.mxu0 %v641_v51 }
  0x2c   :  { %590 = vmatpush3.bf16.msra.mxu1 %v637_v33  ;;  %603 = vmatprep.subr.bf16.mxu0 %v643_v1 }
  0x2d   :  { %591 = vmatprep.subr.bf16.mxu1 %v643_v1 }
  0x2f   :  { %604 = vmatpush3.bf16.msra.mxu0 %v642_v52 }
  0x30   :  { %592 = vmatpush3.bf16.msra.mxu1 %v638_v34 }
  0xe6   :  { %v278_v37 = vpop.f32.mrb[0].mxu1 }
  0xe7   :  { %v575_v38 = vpop.f32.mrb[1].mxu1 }
  0xe8   :  { %v281_v39 = vpop.f32.mrb[2].mxu1 }
  0xe9   :  { %v576_v40 = vpop.f32.mrb[3].mxu1 }
  0xf5   :  { %v540_v41 = vpop.f32.mrb[0].mxu0 }
  0xf6   :  { %v541_v42 = vpop.f32.mrb[1].mxu0 }
  0xf7   :  { %v542_v44 = vadd.f32 %v541_v42, %v540_v41  ;;  %v543_v45 = vpop.f32.mrb[2].mxu0 }
  0xf8   :  { %v544_v46 = vpop.f32.mrb[3].mxu0 }
  0xf9   :  { %v239_v47 = vadd.f32 %v542_v44, %v487_v43 }
  0xfb   :  { %v279_v48 = vadd.f32 %v278_v37, %v239_v47 }
  0xfd   :  { %v284_v49 = vmax.f32 %v279_v48, 0.0 }
  0xff   :  { %v285_v50 = vpack.c.bf16 %v284_v49, %v284_v49 }
 0x101   :  { %594 = vmatmul.mubr.bf16.vlgmr.msra.gmra.mrb[4].mxu1 %v285_v50 }
 0x1d4   :  { %v391_v54 = vpop.f32.mrb[4].mxu1 }
 0x1d5   :  { %v392_v55 = vadd.f32 %v509_v53, %v391_v54  ;;  %v595_v56 = vpop.f32.mrb[5].mxu1 }
 0x1d6   :  { %v394_v57 = vpop.f32.mrb[6].mxu1 }
 0x1d7   :  { %v397_v58 = vmax.f32 %v392_v55, 0.0  ;;  %v596_v59 = vpop.f32.mrb[7].mxu1 }
 0x1d9   :  { %v398_v60 = vpack.c.bf16 %v397_v58, %v397_v58 }
 0x1db   :  { %606 = vmatmul.mubr.msk.bf16.vlgmr.msra.gmra.mrb[4].mxu0 %vm200_vm1, %v398_v60 }
 0x2ae   :  { %v475_v62 = vpop.f32.mrb[4].mxu0 }
 0x2af   :  { %v476_v63 = vadd.f32 %v518_v61, %v475_v62  ;;  %v607_v0 = vpop.f32.mrb[5].mxu0 }
 0x2b0   :  { %v478_v1 = vpop.f32.mrb[6].mxu0 }
 0x2b1   :  { %482 = vst.msk [vmem:[%s833_s7] sm:$0xff] %vm481_vm2, %v476_v63  ;;  %v608_v2 = vpop.f32.mrb[7].mxu0 }

</bundles_post_ra>
